<compile_context>
chip_gen: v7x
topology: tpu7x:2x2x1
jax: 0.10.0
libtpu: 0.0.40
codegen_flags: <defaults>
</compile_context>

<pallas_src>
import math

import jax
import jax.numpy as jnp
from jax import lax
from jax.experimental import pallas as pl
from jax.experimental.pallas import tpu as pltpu

_LN_EPS = 1e-6


def _round_up(x, m):
    return (x + m - 1) // m * m


# ---------------------------------------------------------------------------
# Kernel
# ---------------------------------------------------------------------------
def _scorer_kernel(x_ref, mask_ref, pe_ref, gw_ref, c_ref, out_ref):
    # x_ref:    (TB, TS, D) f32   top_vecs tile
    # mask_ref: (TB, TS, 1) f32   sentence mask
    # pe_ref:   (1,  TS, D) f32   positional-encoding slice (shared across batch)
    # gw_ref:   (1,  1,  D) f32   fused head weight: ln_gamma * wo_weight
    # c_ref:    (1,)        f32   fused bias: sum(ln_beta*wo_weight)+wo_bias (SMEM)
    # out_ref:  (TB, TS, 1) f32   per-sentence scores
    m = mask_ref[...]                                   # already f32
    x = x_ref[...] * m + pe_ref[...]                    # mask-mul + PE (broadcasts)

    # LayerNorm stats over last dim (eps=1e-6, biased variance, matches nn.LayerNorm).
    mu = jnp.mean(x, axis=-1, keepdims=True)
    xc = x - mu
    var = jnp.mean(xc * xc, axis=-1, keepdims=True)

    # LayerNorm affine + linear head folded together; xn never materialized:
    #   sum(((xc*rsqrt)*gamma + beta) * w) + b  ==  sum(xc * (gamma*w)) * rsqrt + c
    s = jnp.sum(xc * gw_ref[...], axis=-1, keepdims=True)          # (TB, TS, 1)
    logit = s * lax.rsqrt(var + _LN_EPS) + c_ref[0]
    out_ref[...] = jax.nn.sigmoid(logit) * m


# ---------------------------------------------------------------------------
# Per-chip tiling plan
# ---------------------------------------------------------------------------
def _chip_plan():
    """Returns (target_tile_payload_bytes, vmem_limit_bytes, force_two_grid_steps)."""
    vmem_phys = None
    try:
        info = pltpu.get_tpu_info()
        vmem_phys = getattr(info, "vmem_capacity_bytes", None)
    except Exception:
        vmem_phys = None
    if vmem_phys is not None and vmem_phys >= 128 * 1024 * 1024:
        # v5e / v6e (128 MiB VMEM, single TensorCore): big tiles, no forced split.
        return 8 * 1024 * 1024, 64 * 1024 * 1024, False
    # v7x (64 MiB VMEM, 2 TensorCores) or unknown chip: conservative budget,
    # keep headroom under physical VMEM, make sure both cores get work.
    return 4 * 1024 * 1024, 40 * 1024 * 1024, True


def _choose_tiles(B, S, D, tile_bytes, vmem_limit, want_two_steps):
    """Pick (tb, ts) so the double-buffered blocks fit the scoped-VMEM budget."""
    d_pad = _round_up(D, 128)
    budget = (vmem_limit * 3) // 4          # headroom for Pallas-internal scratch

    # Sequence tile: full S unless a single (1, S, D) row overshoots the payload
    # target; any partial tile must keep the second-to-last block dim a multiple
    # of 8 (or equal to S).
    ts = S
    if S > 8 and S * D * 4 > tile_bytes:
        ts = max(8, (tile_bytes // (D * 4)) // 8 * 8)
        ts = min(ts, S)
    ts_pad = _round_up(ts, 8)

    # Double-buffered per-step VMEM as a function of tb (last two dims of every
    # block are (8,128)-padded in VMEM).
    per_tb = 2 * ts_pad * d_pad * 4          # top_vecs
    per_tb += 2 * ts_pad * 128 * 4           # mask  (TB, TS, 1) f32, lane-padded
    per_tb += 2 * ts_pad * 128 * 4           # out   (TB, TS, 1) f32, lane-padded
    fixed = 2 * ts_pad * d_pad * 4           # pe (1, TS, D)
    fixed += 2 * 8 * d_pad * 4               # gw (1, 1, D)

    tb_vmem = max(1, (budget - fixed) // per_tb)
    tb_payload = max(1, tile_bytes // (ts * D * 4))
    tb = min(B, tb_vmem, tb_payload)

    # On 2-TC parts make sure the grid has at least 2 steps so megacore sharding
    # has something to shard; on single-TC parts keep the maximal tile.
    if want_two_steps and B >= 2 and pl.cdiv(B, tb) * pl.cdiv(S, ts) < 2:
        tb = pl.cdiv(B, 2)
    return tb, ts


# ---------------------------------------------------------------------------
# Wrapper
# ---------------------------------------------------------------------------
def transformer_cls_scorer(top_vecs, mask, params, *,
                           tile_bytes_override=None, vmem_limit_override=None):
    """top_vecs: [B, S, D] f32, mask: [B, S] bool -> scores [B, S] f32."""
    B, S, D = top_vecs.shape

    tile_bytes, vmem_limit, two_tc = _chip_plan()
    if tile_bytes_override is not None:
        tile_bytes = tile_bytes_override
    if vmem_limit_override is not None:
        vmem_limit = vmem_limit_override
    tb, ts = _choose_tiles(B, S, D, tile_bytes, vmem_limit, two_tc)

    # Mask as f32 (B, S, 1): no in-kernel int8 unpack, negligible (~1/D) extra HBM.
    mask_f32 = mask.astype(jnp.float32).reshape(B, S, 1)

    pe = params["pe"][:, :S, :]                                   # (1, S, D)

    # Fold the LayerNorm affine into the linear head:
    #   sum((xn*gamma + beta) * w) + b  ==  sum(xn * (gamma*w)) + (sum(beta*w) + b)
    w = params["wo_weight"].reshape(D)
    gw = (params["ln_gamma"].reshape(D) * w).reshape(1, 1, D)
    c = (jnp.sum(params["ln_beta"].reshape(D) * w)
         + params["wo_bias"].reshape(())).reshape(1)              # scalar, SMEM

    grid = (pl.cdiv(B, tb), pl.cdiv(S, ts))

    out = pl.pallas_call(
        _scorer_kernel,
        out_shape=jax.ShapeDtypeStruct((B, S, 1), jnp.float32),
        grid_spec=pltpu.PrefetchScalarGridSpec(
            num_scalar_prefetch=0,
            grid=grid,
            in_specs=[
                pl.BlockSpec((tb, ts, D), lambda i, j: (i, j, 0)),      # top_vecs
                pl.BlockSpec((tb, ts, 1), lambda i, j: (i, j, 0)),      # mask (f32)
                pl.BlockSpec((1, ts, D), lambda i, j: (0, j, 0)),       # pe (shared)
                pl.BlockSpec((1, 1, D), lambda i, j: (0, 0, 0)),        # gamma * w
                pl.BlockSpec(memory_space=pltpu.MemorySpace.SMEM),      # fused bias
            ],
            out_specs=pl.BlockSpec((tb, ts, 1), lambda i, j: (i, j, 0)),
        ),
        compiler_params=pltpu.CompilerParams(
            dimension_semantics=("parallel", "parallel"),
            vmem_limit_bytes=vmem_limit,
        ),
    )(top_vecs, mask_f32, pe, gw, c)
    return out.reshape(B, S)


# ---------------------------------------------------------------------------
# Parameters / reference
# ---------------------------------------------------------------------------
def make_positional_encoding(d_model, max_len=5000):
    position = jnp.arange(max_len, dtype=jnp.float32)[:, None]            # (L, 1)
    div_term = jnp.exp(jnp.arange(0, d_model, 2, dtype=jnp.float32)
                       * -(math.log(10000.0) / d_model))                  # (D/2,)
    ang = position * div_term                                             # (L, D/2)
    pe = jnp.stack([jnp.sin(ang), jnp.cos(ang)], axis=-1).reshape(max_len, d_model)
    return pe[None, :, :]                                                 # (1, L, D)


def init_params(key, d_model, max_len=64):
    k_w, k_b, k_g, k_be = jax.random.split(key, 4)
    bound = 1.0 / math.sqrt(d_model)
    return {
        "pe": make_positional_encoding(d_model, max_len),
        # LayerNorm: PyTorch default is gamma=1, beta=0; perturb deterministically
        # so the affine path (folded into gw/c) is exercised.
        "ln_gamma": 1.0 + 0.01 * jax.random.normal(k_g, (d_model,), jnp.float32),
        "ln_beta": 0.01 * jax.random.normal(k_be, (d_model,), jnp.float32),
        # nn.Linear(d_model, 1): weight (1, d_model), bias (1,)
        "wo_weight": jax.random.uniform(k_w, (1, d_model), jnp.float32,
                                        minval=-bound, maxval=bound),
        "wo_bias": jax.random.uniform(k_b, (1,), jnp.float32,
                                      minval=-bound, maxval=bound),
    }


def reference_jax(top_vecs, mask, params):
    """Pure-JAX reference mirroring the PyTorch forward (num_inter_layers=0)."""
    B, S, D = top_vecs.shape
    m = mask.astype(jnp.float32)
    x = top_vecs * m[:, :, None]
    x = x + params["pe"][:, :S]
    mu = jnp.mean(x, axis=-1, keepdims=True)
    var = jnp.mean((x - mu) ** 2, axis=-1, keepdims=True)
    xn = (x - mu) / jnp.sqrt(var + _LN_EPS)
    y = xn * params["ln_gamma"] + params["ln_beta"]
    logit = jnp.einsum("bsd,d->bs", y, params["wo_weight"][0]) + params["wo_bias"][0]
    return jax.nn.sigmoid(logit) * m


if __name__ == "__main__":
    key = jax.random.PRNGKey(0)
    k_x, k_m, k_p, k_x2, k_m2, k_x3, k_m3 = jax.random.split(key, 7)

    # Small canonical shapes: batch=2, n_sents=8, d_model=32.
    B, S, D = 2, 8, 32
    params = init_params(k_p, D, max_len=64)

    top_vecs = jax.random.normal(k_x, (B, S, D), jnp.float32)
    mask = jax.random.bernoulli(k_m, p=0.75, shape=(B, S))   # bool mask

    scores = jax.block_until_ready(transformer_cls_scorer(top_vecs, mask, params))
    ref = reference_jax(top_vecs, mask, params)
    assert scores.shape == (B, S)
    assert jnp.allclose(scores, ref, atol=1e-5, rtol=1e-5), (
        f"mismatch: max abs err {jnp.max(jnp.abs(scores - ref))}")

    # Larger batch exercises the folded-batch (tb > 1, multi-step grid) path.
    B2 = 64
    top_vecs2 = jax.random.normal(k_x2, (B2, S, D), jnp.float32)
    mask2 = jax.random.bernoulli(k_m2, p=0.75, shape=(B2, S))
    scores2 = jax.block_until_ready(transformer_cls_scorer(top_vecs2, mask2, params))
    ref2 = reference_jax(top_vecs2, mask2, params)
    assert scores2.shape == (B2, S)
    assert jnp.allclose(scores2, ref2, atol=1e-5, rtol=1e-5), (
        f"mismatch (B=64): max abs err {jnp.max(jnp.abs(scores2 - ref2))}")

    # Force tiny tiles to exercise the 2D grid (batch AND sequence tiling) with
    # padded partial S-tiles (tb=1, ts=16 over S=24).
    B3, S3 = 4, 24
    params3 = init_params(k_p, D, max_len=64)
    top_vecs3 = jax.random.normal(k_x3, (B3, S3, D), jnp.float32)
    mask3 = jax.random.bernoulli(k_m3, p=0.75, shape=(B3, S3))
    scores3 = jax.block_until_ready(
        transformer_cls_scorer(top_vecs3, mask3, params3, tile_bytes_override=2048))
    ref3 = reference_jax(top_vecs3, mask3, params3)
    assert scores3.shape == (B3, S3)
    assert jnp.allclose(scores3, ref3, atol=1e-5, rtol=1e-5), (
        f"mismatch (S-tiled): max abs err {jnp.max(jnp.abs(scores3 - ref3))}")

    print("KERNEL_OK")
</pallas_src>

<mosaic_0001>
module attributes {stable_mosaic.version = 11 : i64} {
  func.func @_scorer_kernel(%arg0: i32, %arg1: i32, %arg2: memref<1x8x32xf32, #tpu.memory_space<vmem>>, %arg3: memref<1x8x1xf32, #tpu.memory_space<vmem>>, %arg4: memref<1x8x32xf32, #tpu.memory_space<vmem>>, %arg5: memref<1x1x32xf32, #tpu.memory_space<vmem>>, %arg6: memref<1xf32, #tpu.memory_space<smem>>, %arg7: memref<1x8x1xf32, #tpu.memory_space<vmem>>) attributes {dimension_semantics = [#tpu.dimension_semantics<parallel>, #tpu.dimension_semantics<parallel>], iteration_bounds = array<i64: 2, 1>, scalar_prefetch = 0 : i64, scratch_operands = 0 : i64, tpu.core_type = #tpu.core_type<tc>, window_params = [{transform_indices = @transform_0, window_bounds = array<i64: 1, 8, 32>}, {transform_indices = @transform_1, window_bounds = array<i64: 1, 8, 1>}, {transform_indices = @transform_2, window_bounds = array<i64: 1, 8, 32>}, {pipeline_mode = #tpu.pipeline_mode<synchronous>, transform_indices = @transform_3, window_bounds = array<i64: 1, 1, 32>}, {transform_indices = @transform_4, window_bounds = array<i64: 1>}, {transform_indices = @transform_5, window_bounds = array<i64: 1, 8, 1>}]} {
    %c0 = arith.constant 0 : index
    %c0_0 = arith.constant 0 : index
    %c0_1 = arith.constant 0 : index
    %0 = vector.load %arg3[%c0, %c0_0, %c0_1] : memref<1x8x1xf32, #tpu.memory_space<vmem>>, vector<1x8x1xf32>
    %c0_2 = arith.constant 0 : index
    %c0_3 = arith.constant 0 : index
    %c0_4 = arith.constant 0 : index
    %1 = vector.load %arg2[%c0_2, %c0_3, %c0_4] : memref<1x8x32xf32, #tpu.memory_space<vmem>>, vector<1x8x32xf32>
    %2 = vector.broadcast %0 : vector<1x8x1xf32> to vector<1x8x32xf32>
    %3 = arith.mulf %1, %2 : vector<1x8x32xf32>
    %c0_5 = arith.constant 0 : index
    %c0_6 = arith.constant 0 : index
    %c0_7 = arith.constant 0 : index
    %4 = vector.load %arg4[%c0_5, %c0_6, %c0_7] : memref<1x8x32xf32, #tpu.memory_space<vmem>>, vector<1x8x32xf32>
    %5 = arith.addf %3, %4 : vector<1x8x32xf32>
    %cst = arith.constant dense<0.000000e+00> : vector<1x8xf32>
    %6 = vector.multi_reduction <add>, %5, %cst [2] : vector<1x8x32xf32> to vector<1x8xf32>
    %7 = vector.shape_cast %6 : vector<1x8xf32> to vector<1x8x1xf32>
    %cst_8 = arith.constant 3.200000e+01 : f32
    %8 = vector.broadcast %cst_8 : f32 to vector<1x8x1xf32>
    %9 = arith.divf %7, %8 : vector<1x8x1xf32>
    %10 = vector.broadcast %9 : vector<1x8x1xf32> to vector<1x8x32xf32>
    %11 = arith.subf %5, %10 : vector<1x8x32xf32>
    %12 = arith.mulf %11, %11 : vector<1x8x32xf32>
    %cst_9 = arith.constant dense<0.000000e+00> : vector<1x8xf32>
    %13 = vector.multi_reduction <add>, %12, %cst_9 [2] : vector<1x8x32xf32> to vector<1x8xf32>
    %14 = vector.shape_cast %13 : vector<1x8xf32> to vector<1x8x1xf32>
    %cst_10 = arith.constant 3.200000e+01 : f32
    %15 = vector.broadcast %cst_10 : f32 to vector<1x8x1xf32>
    %16 = arith.divf %14, %15 : vector<1x8x1xf32>
    %c0_11 = arith.constant 0 : index
    %c0_12 = arith.constant 0 : index
    %c0_13 = arith.constant 0 : index
    %17 = vector.load %arg5[%c0_11, %c0_12, %c0_13] : memref<1x1x32xf32, #tpu.memory_space<vmem>>, vector<1x1x32xf32>
    %18 = vector.broadcast %17 : vector<1x1x32xf32> to vector<1x8x32xf32>
    %19 = arith.mulf %11, %18 : vector<1x8x32xf32>
    %cst_14 = arith.constant dense<0.000000e+00> : vector<1x8xf32>
    %20 = vector.multi_reduction <add>, %19, %cst_14 [2] : vector<1x8x32xf32> to vector<1x8xf32>
    %21 = vector.shape_cast %20 : vector<1x8xf32> to vector<1x8x1xf32>
    %cst_15 = arith.constant 9.99999997E-7 : f32
    %22 = vector.broadcast %cst_15 : f32 to vector<1x8x1xf32>
    %23 = arith.addf %16, %22 : vector<1x8x1xf32>
    %24 = math.rsqrt %23 : vector<1x8x1xf32>
    %25 = arith.mulf %21, %24 : vector<1x8x1xf32>
    %c0_16 = arith.constant 0 : index
    %26 = memref.load %arg6[%c0_16] : memref<1xf32, #tpu.memory_space<smem>>
    %27 = vector.broadcast %26 : f32 to vector<1x8x1xf32>
    %28 = arith.addf %25, %27 : vector<1x8x1xf32>
    %29 = arith.negf %28 : vector<1x8x1xf32>
    %30 = math.exp %29 : vector<1x8x1xf32>
    %cst_17 = arith.constant 1.000000e+00 : f32
    %31 = vector.broadcast %cst_17 : f32 to vector<1x8x1xf32>
    %32 = arith.addf %31, %30 : vector<1x8x1xf32>
    %33 = arith.divf %31, %32 : vector<1x8x1xf32>
    %34 = arith.mulf %33, %0 : vector<1x8x1xf32>
    %c0_18 = arith.constant 0 : index
    %c0_19 = arith.constant 0 : index
    %c0_20 = arith.constant 0 : index
    %35 = vector.load %arg7[%c0_18, %c0_19, %c0_20] : memref<1x8x1xf32, #tpu.memory_space<vmem>>, vector<1x8x1xf32>
    tpu.vector_store %arg7[%c0_18, %c0_19, %c0_20], %34 {strides = array<i32>} : memref<1x8x1xf32, #tpu.memory_space<vmem>>, vector<1x8x1xf32>,
    return
  }
  func.func @transform_0(%arg0: i32, %arg1: i32) -> (i32, i32, i32) {
    %c0_i32 = arith.constant 0 : i32
    %c0_i32_0 = arith.constant 0 : i32
    return %arg0, %arg1, %c0_i32 : i32, i32, i32
  }
  func.func @transform_1(%arg0: i32, %arg1: i32) -> (i32, i32, i32) {
    %c0_i32 = arith.constant 0 : i32
    %c0_i32_0 = arith.constant 0 : i32
    return %arg0, %arg1, %c0_i32 : i32, i32, i32
  }
  func.func @transform_2(%arg0: i32, %arg1: i32) -> (i32, i32, i32) {
    %c0_i32 = arith.constant 0 : i32
    %c0_i32_0 = arith.constant 0 : i32
    %c0_i32_1 = arith.constant 0 : i32
    return %c0_i32, %arg1, %c0_i32_0 : i32, i32, i32
  }
  func.func @transform_3(%arg0: i32, %arg1: i32) -> (i32, i32, i32) {
    %c0_i32 = arith.constant 0 : i32
    %c0_i32_0 = arith.constant 0 : i32
    %c0_i32_1 = arith.constant 0 : i32
    %c0_i32_2 = arith.constant 0 : i32
    return %c0_i32, %c0_i32_0, %c0_i32_1 : i32, i32, i32
  }
  func.func @transform_4(%arg0: i32, %arg1: i32) -> i32 {
    %c0_i32 = arith.constant 0 : i32
    %c0_i32_0 = arith.constant 0 : i32
    return %c0_i32 : i32
  }
  func.func @transform_5(%arg0: i32, %arg1: i32) -> (i32, i32, i32) {
    %c0_i32 = arith.constant 0 : i32
    %c0_i32_0 = arith.constant 0 : i32
    return %arg0, %arg1, %c0_i32 : i32, i32, i32
  }
}

</mosaic_0001>

<bundles_post_ra>
// kernel: tpu_custom_call.1
= control target key start
LH: loop header
LB: loop body
LE: loop exit
PB: predicated region body
PF: predicated region fallthrough
CT: control target
= control target key end

     0   :  { %s553_s20 = smov 0   ;;  %s555_s21 = smov 0   ;;  %s600_s0 = inlined_call_operand.vmem [shape: f32[2,8,32], index: 0, kind: input, shape index: {}]   ;;  %s601_s1 = inlined_call_operand.vmem [shape: f32[2,8,1], index: 1, kind: input, shape index: {}]   ;;  %s602_s2 = inlined_call_operand.vmem [shape: f32[1,8,32], index: 2, kind: input, shape index: {}]   ;;  %s603_s3 = inlined_call_operand.vmem [shape: f32[1,1,32], index: 3, kind: input, shape index: {}]   ;;  %s604_s4 = inlined_call_operand.<no memory space> [shape: f32[1], index: 4, kind: input, shape index: {}]   ;;  %s605_s5 = inlined_call_operand.vmem [shape: f32[2,8,1], index: 5, kind: output, shape index: {}]  }
   0x1   :  { %10 = sst [smem:[#allocation2]] %s604_s4  ;;  %s557_s22 = smov 0  }
   0x2 LB: > { %s28_s4 = sadd.s32 1, %s513_s21  ;;  %p455_p0 = scmp.ge.s32.totalorder %s517_s22, 1  ;;  %s517_s22 = sphi %s557_s22, %s16_s22   ;;  %s513_s21 = sphi %s555_s21, %s607_s21   ;;  %s509_s20 = sphi %s553_s20, %s606_s20  }
   0x3   : > { %p30_p1 = scmp.ge.s32.totalorder %s28_s4, 2  ;;  %p229_p2 = scmp.lt.s32.totalorder %s517_s22, 3 }
   0x5   : > { %s609_s4 = smov (%p30_p1, %s28_s4), 0  ;;  %p230_p3 = pnand %p455_p0, %p229_p2 }
   0x6   : > { %p272_p4 = scmp.lt.s32.totalorder (!%p230_p3), %s509_s20, 1  ;;  %v519_v0 = vmov (!%p230_p3), 0   ;;  %v305_v4 = vld [vmem:[%s602_s2] sm:$0xff] (!%p230_p3)  ;;  %vm307_vm0 = vcmask (!%p230_p3), 261120   ;;  %s333_s9 = sld [smem:[#allocation2]] (!%p230_p3)  ;;  %vm343_vm1 = vcmask (!%p230_p3), 7168  }
   0x7   : > { %233 = sbr.rel (%p230_p3) target bundleno = 490 (0x1ea), region = 40  ;;  %488 = vset.pattern.permute.xlu0 (!%p230_p3), %v519_v0  ;;  %v459_v11 = vld [vmem:[%s603_s3] ss:$0 sm:$0xff] (!%p230_p3) }
   0xc   : > { %v334_v20 = vstv (!%p230_p3), %s333_s9 }
   0xe   : > { %s611_s20 = smov (!%p272_p4, %s509_s20), 1 }
   0xf   : > { %s571_s23 = sshll.u32 %s611_s20, 3 }
  0x10   : > { %s285_s26 = scalar_lea.vmem %s601_s1, %s571_s23  ;;  %s278_s29 = scalar_lea.vmem %s600_s0, %s571_s23 }
  0x11   : > { %v297_v1 = vld [vmem:[%s285_s26] sm:$0xff]  ;;  %s296_s12 = scalar_lea.vmem %s605_s5, %s571_s23 }
  0x12   : > { %301 = vperm.xlu0 %488, %v297_v1   ;;  %v298_v2 = vld [vmem:[%s278_s29] sm:$0xff] }
  0x91   : > { %v302_v3 = vpop.permute.xlu0 %301 }
  0x92   : > { %v304_v5 = vmul.f32 %v302_v3, %v298_v2 }
  0x94   : > { %v306_v6 = vadd.f32 %v305_v4, %v304_v5 }
  0x96   : > { %v308_v7 = vsel %vm307_vm0, %v306_v6, 0.0 }
  0x97   : > { %309 = vadd.xlane.f32.xlu0 %v308_v7 }
 0x124   : > { %v310_v8 = vpop.xlane.xlu0 %309 }
 0x125   : > { %v312_v9 = vmul.f32 0.03125, %v310_v8 }
 0x127   : > { %v313_v10 = vsub.f32 %v306_v6, %v312_v9 }
 0x129   : > { %v314_v12 = vmul.f32 %v313_v10, %v313_v10  ;;  %v326_v14 = vmul.f32 %v459_v11, %v313_v10 }
 0x12b   : > { %v315_v13 = vsel %vm307_vm0, %v314_v12, 0.0  ;;  %v327_v15 = vsel %vm307_vm0, %v326_v14, 0.0 }
 0x12c   : > { %316 = vadd.xlane.f32.xlu1 %v315_v13 }
 0x130   : > { %328 = vadd.xlane.f32.xlu1 %v327_v15 }
 0x1b9   : > { %v317_v16 = vpop.xlane.xlu1 %316 }
 0x1ba   : > { %v318_v17 = vmul.f32 0.03125, %v317_v16 }
 0x1bc   : > { %v330_v18 = vadd.f32 1e-06, %v318_v17 }
 0x1bd   : > { %v329_v21 = vpop.xlane.xlu1 %328 }
 0x1be   : > { %489 = vrsqrt.f32 %v330_v18 }
 0x1c8   : > { %v490_v19 = vpop.eup %489 }
 0x1c9   : > { %v332_v22 = vmul.f32 %v490_v19, %v329_v21 }
 0x1cb   : > { %v335_v23 = vadd.f32 %v334_v20, %v332_v22 }
 0x1cd   : > { %v460_v24 = vmul.f32 -1.442695, %v335_v23 }
 0x1cf   : > { %491 = vpow2.f32 %v460_v24 }
 0x1d9   : > { %v492_v25 = vpop.eup %491 }
 0x1da   : > { %v339_v26 = vadd.f32 1.0, %v492_v25 }
 0x1dc   : > { %493 = vrcp.f32 %v339_v26 }
 0x1e6   : > { %v494_v27 = vpop.eup %493 }
 0x1e7   : > { %v342_v28 = vmul.f32 %v494_v27, %v297_v1 }
 0x1e9   : > { %344 = vst.msk [vmem:[%s296_s12] sm:$0xff] %vm343_vm1, %v342_v28 }
 0x1ea PF: > { %s16_s22 = sadd.s32 1, %s517_s22   ;;  %s606_s20 = smov %s513_s21 }
 0x1eb   : > { %p13_p5 = scmp.ge.s32.totalorder %s16_s22, 4   ;;  %s607_s21 = smov %s609_s4 }
 0x1ed   :  { %15 = sbr.rel (!%p13_p5) target bundleno = 2 (0x2), region = 76 }

</bundles_post_ra>
